<compile_context>
chip_gen: v6e
topology: v6e:2x2x1
jax: 0.10.0
libtpu: 0.0.40
codegen_flags: <defaults>
</compile_context>

<pallas_src>
import functools

import jax
import jax.numpy as jnp
from jax.experimental import pallas as pl
from jax.experimental.pallas import tpu as pltpu

# Small synthetic configuration (real model: input_dim=4096, hidden=4096, chunk=8, action_dim=7)
NUM_ACTIONS_CHUNK = 8
ACTION_DIM = 7          # also the output dim of log_b_head
INPUT_DIM = 32          # per-token hidden size
HIDDEN_DIM = 32
LN_EPS = 1e-5
OUT_LANES = 128         # lane-dense padded output width (>= ACTION_DIM)

# Row indices inside the packed (16, H) parameter-vector array.
_V_W1_COLSUM, _V_B1 = 0, 1
_V_B0_G, _V_B0_B, _V_B0_BIAS = 2, 3, 4
_V_B1_G, _V_B1_B, _V_B1_BIAS = 5, 6, 7
_V_LN2_G, _V_LN2_B = 8, 9
_N_VEC = 16             # padded to a full f32 sublane tile


def _round_up(x, m):
    return (x + m - 1) // m * m


def _layer_norm(x, gamma, beta):
    # PyTorch nn.LayerNorm: biased variance over last dim, eps inside sqrt.
    mu = jnp.mean(x, axis=-1, keepdims=True)
    var = jnp.mean(jnp.square(x - mu), axis=-1, keepdims=True)
    return (x - mu) * jax.lax.rsqrt(var + LN_EPS) * gamma + beta


def _streamed_matmul(lhs_bf16, w_hbm, wbuf, wsem, kc):
    """lhs_bf16 (tm, K) @ w_hbm (K, N) with the weight streamed from HBM in (kc, N)
    chunks through a manually double-buffered VMEM scratch (statically unrolled)."""
    rows = w_hbm.shape[0]
    nb = rows // kc
    pltpu.make_async_copy(w_hbm.at[pl.ds(0, kc), :], wbuf.at[0], wsem.at[0]).start()
    acc = None
    for c in range(nb):
        slot = c & 1
        pltpu.make_async_copy(w_hbm.at[pl.ds(c * kc, kc), :],
                              wbuf.at[slot], wsem.at[slot]).wait()
        if c + 1 < nb:
            pltpu.make_async_copy(w_hbm.at[pl.ds((c + 1) * kc, kc), :],
                                  wbuf.at[1 - slot], wsem.at[1 - slot]).start()
        part = jnp.dot(lhs_bf16[:, c * kc:(c + 1) * kc], wbuf[slot],
                       preferred_element_type=jnp.float32)
        acc = part if acc is None else acc + part
    return acc


def _laplace_head_kernel(
    # inputs
    x_ref,                       # (tm, tk)        streamed K chunk of the row tile (bf16)
    w1_ref,                      # (tk, H)         streamed K chunk of folded fc1 weight (bf16)
    vec_ref,                     # (16, H)         packed small parameter vectors (f32)
    blk0_w,                      # (H, H)          block-0 weight (VMEM tile or HBM ref)
    blk1_w,                      # (H, H)          block-1 weight (VMEM tile or HBM ref)
    head_w,                      # (H, OUT_LANES)  folded fc2 @ head weight (bf16, zero-padded)
    head_b,                      # (1, OUT_LANES)  folded head bias (f32)
    # outputs
    out_ref,                     # (tm, OUT_LANES) f32
    # scratch
    acc_ref,                     # (tm, H) f32     fc1 partial sums
    s_ref,                       # (tm, 1) f32     row sums of x   (LN1 mean)
    ss_ref,                      # (tm, 1) f32     row sums of x^2 (LN1 variance)
    *stream_scratch,             # (wbuf, wsem) when stream_blocks
    d_in,                        # true (unpadded) LN1 feature count
    stream_blocks,               # static: stream block weights via manual DMA?
    kc,                          # static: chunk rows for streamed block weights
):
    k = pl.program_id(1)

    @pl.when(k == 0)
    def _init():
        acc_ref[...] = jnp.zeros_like(acc_ref)
        s_ref[...] = jnp.zeros_like(s_ref)
        ss_ref[...] = jnp.zeros_like(ss_ref)

    xk_bf = x_ref[...]                       # bf16, straight into the MXU
    xk = xk_bf.astype(jnp.float32)           # f32 only for the LN1 statistics
    s_ref[...] += jnp.sum(xk, axis=-1, keepdims=True)
    ss_ref[...] += jnp.sum(xk * xk, axis=-1, keepdims=True)
    acc_ref[...] += jnp.dot(xk_bf, w1_ref[...], preferred_element_type=jnp.float32)

    @pl.when(k == pl.num_programs(1) - 1)
    def _finalize():
        vecs = vec_ref[...]
        w1_colsum = vecs[_V_W1_COLSUM:_V_W1_COLSUM + 1, :]
        b1 = vecs[_V_B1:_V_B1 + 1, :]

        # LN1 (gamma folded into W, beta folded into b):
        #   LN1(x) @ W + b == rstd * (x @ Wf - mu * colsum(Wf)) + bf
        inv_d = 1.0 / d_in
        mu = s_ref[...] * inv_d
        var = ss_ref[...] * inv_d - mu * mu
        rstd = jax.lax.rsqrt(var + LN_EPS)
        h = rstd * (acc_ref[...] - mu * w1_colsum) + b1

        if stream_blocks:
            wbuf, wsem = stream_scratch

        # two MLPResNet blocks: h = h + relu(Linear(LN(h)))
        blocks = (
            (blk0_w, vecs[_V_B0_G:_V_B0_G + 1, :], vecs[_V_B0_B:_V_B0_B + 1, :],
             vecs[_V_B0_BIAS:_V_B0_BIAS + 1, :]),
            (blk1_w, vecs[_V_B1_G:_V_B1_G + 1, :], vecs[_V_B1_B:_V_B1_B + 1, :],
             vecs[_V_B1_BIAS:_V_B1_BIAS + 1, :]),
        )
        for w, g, b, bias in blocks:
            lnh = _layer_norm(h, g, b).astype(jnp.bfloat16)
            if stream_blocks:
                ff = _streamed_matmul(lnh, w, wbuf, wsem, kc)
            else:
                ff = jnp.dot(lnh, w[...], preferred_element_type=jnp.float32)
            h = h + jnp.maximum(ff + bias, 0.0)

        # LN2 -> (fc2 folded into the log_b head), lane-dense padded output
        h = _layer_norm(h, vecs[_V_LN2_G:_V_LN2_G + 1, :],
                        vecs[_V_LN2_B:_V_LN2_B + 1, :]).astype(jnp.bfloat16)
        out_ref[...] = jnp.dot(h, head_w[...],
                               preferred_element_type=jnp.float32) + head_b[...]


def _pick_tk(d_pad):
    for t in (1024, 512, 256, 128):
        if d_pad % t == 0 and d_pad // t >= 2:
            return t
    return d_pad


def _pick_block_chunk(h):
    for t in (512, 256, 128):
        if h % t == 0:
            return t
    return h


def laplace_scale_head_pallas(actions_hidden_states, params, *,
                              num_row_tiles=1,          # pass 2 on v7x (2 TensorCores)
                              tk=None,
                              stream_block_weights=None):
    B = actions_hidden_states.shape[0]
    x = actions_hidden_states.reshape(B, NUM_ACTIONS_CHUNK, -1)       # (B, C, D_in)
    D_in = x.shape[-1]
    M = B * NUM_ACTIONS_CHUNK
    x_flat = x.reshape(M, D_in)

    H = params["fc1_w"].shape[1]
    A = params["head_w"].shape[1]
    assert A <= OUT_LANES

    # ---- host-side algebraic folds (once per parameter set) -----------------
    w1f = (params["fc1_w"] * params["ln1_g"].reshape(-1, 1)).astype(jnp.float32)
    b1f = params["ln1_b"] @ params["fc1_w"] + params["fc1_b"]         # (1, H)
    head_wf = params["fc2_w"] @ params["head_w"]                      # (H, A)
    head_bf = params["fc2_b"] @ params["head_w"] + params["head_b"]   # (1, A)
    head_w_pad = jnp.zeros((H, OUT_LANES), jnp.float32).at[:, :A].set(head_wf)
    head_w_pad = head_w_pad.astype(jnp.bfloat16)
    head_b_pad = jnp.zeros((1, OUT_LANES), jnp.float32).at[:, :A].set(head_bf)

    # ---- tiling / padding ----------------------------------------------------
    # Row tile: as large as possible (re-streams the big fc1 weight per row tile),
    # capped only by the f32 accumulator scratch budget (~8 MiB -> tm=512 at H=4096).
    tm_cap = max(16, ((8 << 20) // (4 * H)) // 16 * 16)
    rows_per_tile = -(-M // max(1, num_row_tiles))
    tm = min(_round_up(rows_per_tile, 16), tm_cap)
    M_pad = _round_up(M, tm)
    D_pad = _round_up(D_in, 128)
    if tk is None:
        tk = _pick_tk(D_pad)
    assert D_pad % tk == 0

    x_bf = x_flat.astype(jnp.bfloat16)                                # halve x HBM traffic
    if M_pad != M or D_pad != D_in:
        x_bf = jnp.zeros((M_pad, D_pad), jnp.bfloat16).at[:M, :D_in].set(x_bf)
    if D_pad != D_in:
        w1f = jnp.zeros((D_pad, H), jnp.float32).at[:D_in, :].set(w1f)
    w1_bf = w1f.astype(jnp.bfloat16)
    # colsum from the bf16-rounded weight so it matches the bf16 accumulation exactly
    w1_colsum = jnp.sum(w1_bf.astype(jnp.float32), axis=0, keepdims=True)

    # Pack the small (1, H) parameter vectors into one (16, H) array (one DMA, one buffer).
    vec_pack = jnp.zeros((_N_VEC, H), jnp.float32)
    for idx, v in (
        (_V_W1_COLSUM, w1_colsum), (_V_B1, b1f),
        (_V_B0_G, params["blk0_ln_g"]), (_V_B0_B, params["blk0_ln_b"]),
        (_V_B0_BIAS, params["blk0_b"]),
        (_V_B1_G, params["blk1_ln_g"]), (_V_B1_B, params["blk1_ln_b"]),
        (_V_B1_BIAS, params["blk1_b"]),
        (_V_LN2_G, params["ln2_g"]), (_V_LN2_B, params["ln2_b"]),
    ):
        vec_pack = vec_pack.at[idx, :].set(v.reshape(-1))

    blk0_w = params["blk0_w"].astype(jnp.bfloat16)
    blk1_w = params["blk1_w"].astype(jnp.bfloat16)

    # Stream the H x H block weights through manual DMA when they would blow the VMEM
    # budget (real H=4096 -> 64 MiB bf16, mandatory on v7x, also frees VMEM on v5e/v6e).
    if stream_block_weights is None:
        stream_block_weights = (2 * H * H * 2) > (24 << 20)
    kc = _pick_block_chunk(H) if stream_block_weights else 0

    grid = (M_pad // tm, D_pad // tk)
    in_specs = [
        pl.BlockSpec((tm, tk), lambda i, k: (i, k)),                  # x: rows x streamed K
        pl.BlockSpec((tk, H), lambda i, k: (k, 0)),                   # folded fc1 weight: streamed K
        pl.BlockSpec((_N_VEC, H), lambda i, k: (0, 0)),               # packed parameter vectors
    ]
    if stream_block_weights:
        in_specs += [pl.BlockSpec(memory_space=pl.ANY),               # block weights stay in HBM
                     pl.BlockSpec(memory_space=pl.ANY)]
    else:
        in_specs += [pl.BlockSpec((H, H), lambda i, k: (0, 0)),       # resident block weights
                     pl.BlockSpec((H, H), lambda i, k: (0, 0))]
    in_specs += [pl.BlockSpec((H, OUT_LANES), lambda i, k: (0, 0)),   # folded head weight
                 pl.BlockSpec((1, OUT_LANES), lambda i, k: (0, 0))]   # folded head bias

    scratch_shapes = [
        pltpu.VMEM((tm, H), jnp.float32),    # fc1 accumulator
        pltpu.VMEM((tm, 1), jnp.float32),    # sum(x)
        pltpu.VMEM((tm, 1), jnp.float32),    # sum(x^2)
    ]
    if stream_block_weights:
        scratch_shapes += [pltpu.VMEM((2, kc, H), jnp.bfloat16),      # block-weight double buffer
                           pltpu.SemaphoreType.DMA((2,))]

    # ---- explicit VMEM budget -------------------------------------------------
    resident_blk = 0 if stream_block_weights else 2 * 2 * H * H * 2
    stream_blk = (2 * kc * H * 2) if stream_block_weights else 0
    vmem_bytes = (
        2 * tm * tk * 2 + 2 * tk * H * 2                              # streamed x / w1 (double buf)
        + 2 * _N_VEC * H * 4 + 2 * H * OUT_LANES * 2 + 2 * 8 * OUT_LANES * 4
        + resident_blk + stream_blk
        + 2 * tm * OUT_LANES * 4                                      # output
        + tm * H * 4 + 2 * tm * 128 * 4                               # scratch
    )
    vmem_limit = max(int(vmem_bytes * 1.3) + (2 << 20), 32 << 20)
    try:
        phys = pltpu.get_tpu_info().vmem_capacity_bytes
        vmem_limit = min(vmem_limit, int(phys * 0.9))
    except Exception:
        vmem_limit = min(vmem_limit, 100 << 20)

    kernel = functools.partial(_laplace_head_kernel, d_in=float(D_in),
                               stream_blocks=stream_block_weights, kc=kc)

    out_flat = pl.pallas_call(
        kernel,
        out_shape=jax.ShapeDtypeStruct((M_pad, OUT_LANES), jnp.float32),
        grid=grid,
        in_specs=in_specs,
        out_specs=pl.BlockSpec((tm, OUT_LANES), lambda i, k: (i, 0)),
        scratch_shapes=scratch_shapes,
        compiler_params=pltpu.CompilerParams(
            dimension_semantics=("parallel", "arbitrary"),
            vmem_limit_bytes=vmem_limit,
        ),
    )(x_bf, w1_bf, vec_pack, blk0_w, blk1_w, head_w_pad, head_b_pad)

    return out_flat[:M, :A].reshape(B, NUM_ACTIONS_CHUNK, A)


def init_params(key, input_dim, hidden_dim, action_dim):
    d_in = input_dim * ACTION_DIM
    keys = jax.random.split(key, 10)

    def linear(kw, kb, fan_in, fan_out):
        # torch.nn.Linear default init: U(-1/sqrt(fan_in), 1/sqrt(fan_in))
        bound = 1.0 / (fan_in ** 0.5)
        w = jax.random.uniform(kw, (fan_in, fan_out), jnp.float32, -bound, bound)
        b = jax.random.uniform(kb, (1, fan_out), jnp.float32, -bound, bound)
        return w, b

    fc1_w, fc1_b = linear(keys[0], keys[1], d_in, hidden_dim)
    blk0_w, blk0_b = linear(keys[2], keys[3], hidden_dim, hidden_dim)
    blk1_w, blk1_b = linear(keys[4], keys[5], hidden_dim, hidden_dim)
    fc2_w, fc2_b = linear(keys[6], keys[7], hidden_dim, hidden_dim)

    # log_b_head: xavier_uniform(gain=0.01) weight, bias = -3.0
    xav_bound = 0.01 * (6.0 / (hidden_dim + action_dim)) ** 0.5
    head_w = jax.random.uniform(keys[8], (hidden_dim, action_dim), jnp.float32,
                                -xav_bound, xav_bound)
    head_b = jnp.full((1, action_dim), -3.0, jnp.float32)

    return {
        "ln1_g": jnp.ones((1, d_in), jnp.float32),
        "ln1_b": jnp.zeros((1, d_in), jnp.float32),
        "fc1_w": fc1_w, "fc1_b": fc1_b,
        "blk0_ln_g": jnp.ones((1, hidden_dim), jnp.float32),
        "blk0_ln_b": jnp.zeros((1, hidden_dim), jnp.float32),
        "blk0_w": blk0_w, "blk0_b": blk0_b,
        "blk1_ln_g": jnp.ones((1, hidden_dim), jnp.float32),
        "blk1_ln_b": jnp.zeros((1, hidden_dim), jnp.float32),
        "blk1_w": blk1_w, "blk1_b": blk1_b,
        "ln2_g": jnp.ones((1, hidden_dim), jnp.float32),
        "ln2_b": jnp.zeros((1, hidden_dim), jnp.float32),
        "fc2_w": fc2_w, "fc2_b": fc2_b,
        "head_w": head_w, "head_b": head_b,
    }


def laplace_scale_head_ref(actions_hidden_states, params):
    """Pure-JAX f32 reference mirroring the PyTorch forward (unfolded params)."""
    B = actions_hidden_states.shape[0]
    x = actions_hidden_states.reshape(B, NUM_ACTIONS_CHUNK, -1).astype(jnp.float32)
    h = _layer_norm(x, params["ln1_g"], params["ln1_b"]) @ params["fc1_w"] + params["fc1_b"]
    for p in ("blk0", "blk1"):
        ff = _layer_norm(h, params[f"{p}_ln_g"], params[f"{p}_ln_b"]) @ params[f"{p}_w"] + params[f"{p}_b"]
        h = h + jnp.maximum(ff, 0.0)
    h = _layer_norm(h, params["ln2_g"], params["ln2_b"]) @ params["fc2_w"] + params["fc2_b"]
    return h @ params["head_w"] + params["head_b"]


if __name__ == "__main__":
    key = jax.random.PRNGKey(0)
    k_param, k_x = jax.random.split(key)

    params = init_params(k_param, INPUT_DIM, HIDDEN_DIM, ACTION_DIM)

    # actions_hidden_states: (B, NUM_ACTIONS_CHUNK * ACTION_DIM, input_dim)
    B = 2
    actions_hidden_states = jax.random.normal(
        k_x, (B, NUM_ACTIONS_CHUNK * ACTION_DIM, INPUT_DIM), jnp.float32
    )

    ref = laplace_scale_head_ref(actions_hidden_states, params)

    # Path 1: resident block weights (auto-selected at this toy size; the v5e/v6e path).
    out_resident = jax.block_until_ready(
        laplace_scale_head_pallas(actions_hidden_states, params))
    assert out_resident.shape == (B, NUM_ACTIONS_CHUNK, ACTION_DIM), out_resident.shape

    # Path 2: manually-streamed block weights (the big-H / v7x path), exercised here too.
    out_streamed = jax.block_until_ready(
        laplace_scale_head_pallas(actions_hidden_states, params,
                                  stream_block_weights=True))
    assert out_streamed.shape == (B, NUM_ACTIONS_CHUNK, ACTION_DIM), out_streamed.shape

    # bf16 MXU inputs with f32 accumulation -> compare at bf16-level tolerance.
    for name, out in (("resident", out_resident), ("streamed", out_streamed)):
        if not jnp.allclose(out, ref, rtol=1e-2, atol=1e-2):
            max_err = float(jnp.max(jnp.abs(out - ref)))
            raise AssertionError(f"Pallas ({name}) mismatch vs reference (max abs err {max_err})")

    print("KERNEL_OK")
</pallas_src>

<mosaic_0001>
module attributes {stable_mosaic.version = 11 : i64} {
  func.func @_laplace_head_kernel(%arg0: i32, %arg1: i32, %arg2: memref<16x128xbf16, #tpu.memory_space<vmem>>, %arg3: memref<128x32xbf16, #tpu.memory_space<vmem>>, %arg4: memref<16x32xf32, #tpu.memory_space<vmem>>, %arg5: memref<32x32xbf16, #tpu.memory_space<vmem>>, %arg6: memref<32x32xbf16, #tpu.memory_space<vmem>>, %arg7: memref<32x128xbf16, #tpu.memory_space<vmem>>, %arg8: memref<1x128xf32, #tpu.memory_space<vmem>>, %arg9: memref<16x128xf32, #tpu.memory_space<vmem>>, %arg10: memref<16x32xf32, #tpu.memory_space<vmem>>, %arg11: memref<16x1xf32, #tpu.memory_space<vmem>>, %arg12: memref<16x1xf32, #tpu.memory_space<vmem>>) attributes {dimension_semantics = [#tpu.dimension_semantics<parallel>, #tpu.dimension_semantics<arbitrary>], iteration_bounds = array<i64: 1, 2>, scalar_prefetch = 0 : i64, scratch_operands = 3 : i64, tpu.core_type = #tpu.core_type<tc>, window_params = [{transform_indices = @transform_0, window_bounds = array<i64: 16, 128>}, {transform_indices = @transform_1, window_bounds = array<i64: 128, 32>}, {pipeline_mode = #tpu.pipeline_mode<synchronous>, transform_indices = @transform_2, window_bounds = array<i64: 16, 32>}, {pipeline_mode = #tpu.pipeline_mode<synchronous>, transform_indices = @transform_3, window_bounds = array<i64: 32, 32>}, {pipeline_mode = #tpu.pipeline_mode<synchronous>, transform_indices = @transform_4, window_bounds = array<i64: 32, 32>}, {pipeline_mode = #tpu.pipeline_mode<synchronous>, transform_indices = @transform_5, window_bounds = array<i64: 32, 128>}, {pipeline_mode = #tpu.pipeline_mode<synchronous>, transform_indices = @transform_6, window_bounds = array<i64: 1, 128>}, {transform_indices = @transform_7, window_bounds = array<i64: 16, 128>}]} {
    %c0_i32 = arith.constant 0 : i32
    %0 = arith.cmpi eq, %arg1, %c0_i32 : i32
    %1 = arith.extui %0 : i1 to i32
    %c0_i32_0 = arith.constant 0 : i32
    %2 = arith.cmpi ne, %1, %c0_i32_0 : i32
    scf.if %2 {
      %cst_19 = arith.constant 0.000000e+00 : f32
      %24 = vector.broadcast %cst_19 : f32 to vector<16x32xf32>
      %c0_20 = arith.constant 0 : index
      %c0_21 = arith.constant 0 : index
      %25 = vector.load %arg10[%c0_20, %c0_21] : memref<16x32xf32, #tpu.memory_space<vmem>>, vector<16x32xf32>
      tpu.vector_store %arg10[%c0_20, %c0_21], %24 {strides = array<i32>} : memref<16x32xf32, #tpu.memory_space<vmem>>, vector<16x32xf32>,
      %cst_22 = arith.constant 0.000000e+00 : f32
      %26 = vector.broadcast %cst_22 : f32 to vector<16x1xf32>
      %c0_23 = arith.constant 0 : index
      %c0_24 = arith.constant 0 : index
      %27 = vector.load %arg11[%c0_23, %c0_24] : memref<16x1xf32, #tpu.memory_space<vmem>>, vector<16x1xf32>
      tpu.vector_store %arg11[%c0_23, %c0_24], %26 {strides = array<i32>} : memref<16x1xf32, #tpu.memory_space<vmem>>, vector<16x1xf32>,
      %cst_25 = arith.constant 0.000000e+00 : f32
      %28 = vector.broadcast %cst_25 : f32 to vector<16x1xf32>
      %c0_26 = arith.constant 0 : index
      %c0_27 = arith.constant 0 : index
      %29 = vector.load %arg12[%c0_26, %c0_27] : memref<16x1xf32, #tpu.memory_space<vmem>>, vector<16x1xf32>
      tpu.vector_store %arg12[%c0_26, %c0_27], %28 {strides = array<i32>} : memref<16x1xf32, #tpu.memory_space<vmem>>, vector<16x1xf32>,
    } else {
    }
    %c0 = arith.constant 0 : index
    %c0_1 = arith.constant 0 : index
    %3 = vector.load %arg2[%c0, %c0_1] : memref<16x128xbf16, #tpu.memory_space<vmem>>, vector<16x128xbf16>
    %4 = arith.extf %3 : vector<16x128xbf16> to vector<16x128xf32>
    %c0_2 = arith.constant 0 : index
    %c0_3 = arith.constant 0 : index
    %5 = vector.load %arg11[%c0_2, %c0_3] : memref<16x1xf32, #tpu.memory_space<vmem>>, vector<16x1xf32>
    %cst = arith.constant dense<0.000000e+00> : vector<16xf32>
    %6 = vector.multi_reduction <add>, %4, %cst [1] : vector<16x128xf32> to vector<16xf32>
    %7 = vector.shape_cast %6 : vector<16xf32> to vector<16x1xf32>
    %8 = arith.addf %5, %7 : vector<16x1xf32>
    %c0_4 = arith.constant 0 : index
    %c0_5 = arith.constant 0 : index
    %9 = vector.load %arg11[%c0_4, %c0_5] : memref<16x1xf32, #tpu.memory_space<vmem>>, vector<16x1xf32>
    tpu.vector_store %arg11[%c0_4, %c0_5], %8 {strides = array<i32>} : memref<16x1xf32, #tpu.memory_space<vmem>>, vector<16x1xf32>,
    %c0_6 = arith.constant 0 : index
    %c0_7 = arith.constant 0 : index
    %10 = vector.load %arg12[%c0_6, %c0_7] : memref<16x1xf32, #tpu.memory_space<vmem>>, vector<16x1xf32>
    %11 = arith.mulf %4, %4 : vector<16x128xf32>
    %cst_8 = arith.constant dense<0.000000e+00> : vector<16xf32>
    %12 = vector.multi_reduction <add>, %11, %cst_8 [1] : vector<16x128xf32> to vector<16xf32>
    %13 = vector.shape_cast %12 : vector<16xf32> to vector<16x1xf32>
    %14 = arith.addf %10, %13 : vector<16x1xf32>
    %c0_9 = arith.constant 0 : index
    %c0_10 = arith.constant 0 : index
    %15 = vector.load %arg12[%c0_9, %c0_10] : memref<16x1xf32, #tpu.memory_space<vmem>>, vector<16x1xf32>
    tpu.vector_store %arg12[%c0_9, %c0_10], %14 {strides = array<i32>} : memref<16x1xf32, #tpu.memory_space<vmem>>, vector<16x1xf32>,
    %c0_11 = arith.constant 0 : index
    %c0_12 = arith.constant 0 : index
    %16 = vector.load %arg10[%c0_11, %c0_12] : memref<16x32xf32, #tpu.memory_space<vmem>>, vector<16x32xf32>
    %c0_13 = arith.constant 0 : index
    %c0_14 = arith.constant 0 : index
    %17 = vector.load %arg3[%c0_13, %c0_14] : memref<128x32xbf16, #tpu.memory_space<vmem>>, vector<128x32xbf16>
    %cst_15 = arith.constant dense<0.000000e+00> : vector<16x32xf32>
    %18 = tpu.matmul %3, %17, %cst_15 {dimension_numbers = #tpu.dot_dimension_numbers<[1], [0], [0], [1], [0, 0, 1, 1], [], []>} : vector<16x128xbf16>, vector<128x32xbf16>, vector<16x32xf32> -> vector<16x32xf32>
    %19 = arith.addf %16, %18 : vector<16x32xf32>
    %c0_16 = arith.constant 0 : index
    %c0_17 = arith.constant 0 : index
    %20 = vector.load %arg10[%c0_16, %c0_17] : memref<16x32xf32, #tpu.memory_space<vmem>>, vector<16x32xf32>
    tpu.vector_store %arg10[%c0_16, %c0_17], %19 {strides = array<i32>} : memref<16x32xf32, #tpu.memory_space<vmem>>, vector<16x32xf32>,
    %c1_i32 = arith.constant 1 : i32
    %21 = arith.cmpi eq, %arg1, %c1_i32 : i32
    %22 = arith.extui %21 : i1 to i32
    %c0_i32_18 = arith.constant 0 : i32
    %23 = arith.cmpi ne, %22, %c0_i32_18 : i32
    scf.if %23 {
      %c0_19 = arith.constant 0 : index
      %c0_20 = arith.constant 0 : index
      %24 = vector.load %arg4[%c0_19, %c0_20] : memref<16x32xf32, #tpu.memory_space<vmem>>, vector<16x32xf32>
      %25 = vector.extract_strided_slice %24 {offsets = [0, 0], sizes = [1, 32], strides = [1, 1]} : vector<16x32xf32> to vector<1x32xf32>
      %26 = vector.extract_strided_slice %24 {offsets = [1, 0], sizes = [1, 32], strides = [1, 1]} : vector<16x32xf32> to vector<1x32xf32>
      %c0_21 = arith.constant 0 : index
      %c0_22 = arith.constant 0 : index
      %27 = vector.load %arg11[%c0_21, %c0_22] : memref<16x1xf32, #tpu.memory_space<vmem>>, vector<16x1xf32>
      %cst_23 = arith.constant 0.00446428591 : f32
      %28 = vector.broadcast %cst_23 : f32 to vector<16x1xf32>
      %29 = arith.mulf %27, %28 : vector<16x1xf32>
      %c0_24 = arith.constant 0 : index
      %c0_25 = arith.constant 0 : index
      %30 = vector.load %arg12[%c0_24, %c0_25] : memref<16x1xf32, #tpu.memory_space<vmem>>, vector<16x1xf32>
      %cst_26 = arith.constant 0.00446428591 : f32
      %31 = vector.broadcast %cst_26 : f32 to vector<16x1xf32>
      %32 = arith.mulf %30, %31 : vector<16x1xf32>
      %33 = arith.mulf %29, %29 : vector<16x1xf32>
      %34 = arith.subf %32, %33 : vector<16x1xf32>
      %cst_27 = arith.constant 9.99999974E-6 : f32
      %35 = vector.broadcast %cst_27 : f32 to vector<16x1xf32>
      %36 = arith.addf %34, %35 : vector<16x1xf32>
      %37 = math.rsqrt %36 : vector<16x1xf32>
      %c0_28 = arith.constant 0 : index
      %c0_29 = arith.constant 0 : index
      %38 = vector.load %arg10[%c0_28, %c0_29] : memref<16x32xf32, #tpu.memory_space<vmem>>, vector<16x32xf32>
      %39 = vector.broadcast %29 : vector<16x1xf32> to vector<16x32xf32>
      %40 = vector.broadcast %25 : vector<1x32xf32> to vector<16x32xf32>
      %41 = arith.mulf %39, %40 : vector<16x32xf32>
      %42 = arith.subf %38, %41 : vector<16x32xf32>
      %43 = vector.broadcast %37 : vector<16x1xf32> to vector<16x32xf32>
      %44 = arith.mulf %43, %42 : vector<16x32xf32>
      %45 = vector.broadcast %26 : vector<1x32xf32> to vector<16x32xf32>
      %46 = arith.addf %44, %45 : vector<16x32xf32>
      %47 = vector.extract_strided_slice %24 {offsets = [2, 0], sizes = [1, 32], strides = [1, 1]} : vector<16x32xf32> to vector<1x32xf32>
      %48 = vector.extract_strided_slice %24 {offsets = [3, 0], sizes = [1, 32], strides = [1, 1]} : vector<16x32xf32> to vector<1x32xf32>
      %49 = vector.extract_strided_slice %24 {offsets = [4, 0], sizes = [1, 32], strides = [1, 1]} : vector<16x32xf32> to vector<1x32xf32>
      %50 = vector.extract_strided_slice %24 {offsets = [5, 0], sizes = [1, 32], strides = [1, 1]} : vector<16x32xf32> to vector<1x32xf32>
      %51 = vector.extract_strided_slice %24 {offsets = [6, 0], sizes = [1, 32], strides = [1, 1]} : vector<16x32xf32> to vector<1x32xf32>
      %52 = vector.extract_strided_slice %24 {offsets = [7, 0], sizes = [1, 32], strides = [1, 1]} : vector<16x32xf32> to vector<1x32xf32>
      %cst_30 = arith.constant dense<0.000000e+00> : vector<16xf32>
      %53 = vector.multi_reduction <add>, %46, %cst_30 [1] : vector<16x32xf32> to vector<16xf32>
      %54 = vector.shape_cast %53 : vector<16xf32> to vector<16x1xf32>
      %cst_31 = arith.constant 3.200000e+01 : f32
      %55 = vector.broadcast %cst_31 : f32 to vector<16x1xf32>
      %56 = arith.divf %54, %55 : vector<16x1xf32>
      %57 = vector.broadcast %56 : vector<16x1xf32> to vector<16x32xf32>
      %58 = arith.subf %46, %57 : vector<16x32xf32>
      %59 = arith.mulf %58, %58 : vector<16x32xf32>
      %cst_32 = arith.constant dense<0.000000e+00> : vector<16xf32>
      %60 = vector.multi_reduction <add>, %59, %cst_32 [1] : vector<16x32xf32> to vector<16xf32>
      %61 = vector.shape_cast %60 : vector<16xf32> to vector<16x1xf32>
      %cst_33 = arith.constant 3.200000e+01 : f32
      %62 = vector.broadcast %cst_33 : f32 to vector<16x1xf32>
      %63 = arith.divf %61, %62 : vector<16x1xf32>
      %64 = vector.broadcast %56 : vector<16x1xf32> to vector<16x32xf32>
      %65 = arith.subf %46, %64 : vector<16x32xf32>
      %cst_34 = arith.constant 9.99999974E-6 : f32
      %66 = vector.broadcast %cst_34 : f32 to vector<16x1xf32>
      %67 = arith.addf %63, %66 : vector<16x1xf32>
      %68 = math.rsqrt %67 : vector<16x1xf32>
      %69 = vector.broadcast %68 : vector<16x1xf32> to vector<16x32xf32>
      %70 = arith.mulf %65, %69 : vector<16x32xf32>
      %71 = vector.broadcast %47 : vector<1x32xf32> to vector<16x32xf32>
      %72 = arith.mulf %70, %71 : vector<16x32xf32>
      %73 = vector.broadcast %48 : vector<1x32xf32> to vector<16x32xf32>
      %74 = arith.addf %72, %73 : vector<16x32xf32>
      %75 = arith.truncf %74 : vector<16x32xf32> to vector<16x32xbf16>
      %c0_35 = arith.constant 0 : index
      %c0_36 = arith.constant 0 : index
      %76 = vector.load %arg5[%c0_35, %c0_36] : memref<32x32xbf16, #tpu.memory_space<vmem>>, vector<32x32xbf16>
      %cst_37 = arith.constant dense<0.000000e+00> : vector<16x32xf32>
      %77 = tpu.matmul %75, %76, %cst_37 {dimension_numbers = #tpu.dot_dimension_numbers<[1], [0], [0], [1], [0, 0, 1, 1], [], []>} : vector<16x32xbf16>, vector<32x32xbf16>, vector<16x32xf32> -> vector<16x32xf32>
      %78 = vector.broadcast %49 : vector<1x32xf32> to vector<16x32xf32>
      %79 = arith.addf %77, %78 : vector<16x32xf32>
      %cst_38 = arith.constant 0.000000e+00 : f32
      %80 = vector.broadcast %cst_38 : f32 to vector<16x32xf32>
      %81 = arith.maximumf %79, %80 : vector<16x32xf32>
      %82 = arith.addf %46, %81 : vector<16x32xf32>
      %cst_39 = arith.constant dense<0.000000e+00> : vector<16xf32>
      %83 = vector.multi_reduction <add>, %82, %cst_39 [1] : vector<16x32xf32> to vector<16xf32>
      %84 = vector.shape_cast %83 : vector<16xf32> to vector<16x1xf32>
      %cst_40 = arith.constant 3.200000e+01 : f32
      %85 = vector.broadcast %cst_40 : f32 to vector<16x1xf32>
      %86 = arith.divf %84, %85 : vector<16x1xf32>
      %87 = vector.broadcast %86 : vector<16x1xf32> to vector<16x32xf32>
      %88 = arith.subf %82, %87 : vector<16x32xf32>
      %89 = arith.mulf %88, %88 : vector<16x32xf32>
      %cst_41 = arith.constant dense<0.000000e+00> : vector<16xf32>
      %90 = vector.multi_reduction <add>, %89, %cst_41 [1] : vector<16x32xf32> to vector<16xf32>
      %91 = vector.shape_cast %90 : vector<16xf32> to vector<16x1xf32>
      %cst_42 = arith.constant 3.200000e+01 : f32
      %92 = vector.broadcast %cst_42 : f32 to vector<16x1xf32>
      %93 = arith.divf %91, %92 : vector<16x1xf32>
      %94 = vector.broadcast %86 : vector<16x1xf32> to vector<16x32xf32>
      %95 = arith.subf %82, %94 : vector<16x32xf32>
      %cst_43 = arith.constant 9.99999974E-6 : f32
      %96 = vector.broadcast %cst_43 : f32 to vector<16x1xf32>
      %97 = arith.addf %93, %96 : vector<16x1xf32>
      %98 = math.rsqrt %97 : vector<16x1xf32>
      %99 = vector.broadcast %98 : vector<16x1xf32> to vector<16x32xf32>
      %100 = arith.mulf %95, %99 : vector<16x32xf32>
      %101 = vector.broadcast %50 : vector<1x32xf32> to vector<16x32xf32>
      %102 = arith.mulf %100, %101 : vector<16x32xf32>
      %103 = vector.broadcast %51 : vector<1x32xf32> to vector<16x32xf32>
      %104 = arith.addf %102, %103 : vector<16x32xf32>
      %105 = arith.truncf %104 : vector<16x32xf32> to vector<16x32xbf16>
      %c0_44 = arith.constant 0 : index
      %c0_45 = arith.constant 0 : index
      %106 = vector.load %arg6[%c0_44, %c0_45] : memref<32x32xbf16, #tpu.memory_space<vmem>>, vector<32x32xbf16>
      %cst_46 = arith.constant dense<0.000000e+00> : vector<16x32xf32>
      %107 = tpu.matmul %105, %106, %cst_46 {dimension_numbers = #tpu.dot_dimension_numbers<[1], [0], [0], [1], [0, 0, 1, 1], [], []>} : vector<16x32xbf16>, vector<32x32xbf16>, vector<16x32xf32> -> vector<16x32xf32>
      %108 = vector.broadcast %52 : vector<1x32xf32> to vector<16x32xf32>
      %109 = arith.addf %107, %108 : vector<16x32xf32>
      %cst_47 = arith.constant 0.000000e+00 : f32
      %110 = vector.broadcast %cst_47 : f32 to vector<16x32xf32>
      %111 = arith.maximumf %109, %110 : vector<16x32xf32>
      %112 = arith.addf %82, %111 : vector<16x32xf32>
      %113 = vector.extract_strided_slice %24 {offsets = [8, 0], sizes = [1, 32], strides = [1, 1]} : vector<16x32xf32> to vector<1x32xf32>
      %114 = vector.extract_strided_slice %24 {offsets = [9, 0], sizes = [1, 32], strides = [1, 1]} : vector<16x32xf32> to vector<1x32xf32>
      %cst_48 = arith.constant dense<0.000000e+00> : vector<16xf32>
      %115 = vector.multi_reduction <add>, %112, %cst_48 [1] : vector<16x32xf32> to vector<16xf32>
      %116 = vector.shape_cast %115 : vector<16xf32> to vector<16x1xf32>
      %cst_49 = arith.constant 3.200000e+01 : f32
      %117 = vector.broadcast %cst_49 : f32 to vector<16x1xf32>
      %118 = arith.divf %116, %117 : vector<16x1xf32>
      %119 = vector.broadcast %118 : vector<16x1xf32> to vector<16x32xf32>
      %120 = arith.subf %112, %119 : vector<16x32xf32>
      %121 = arith.mulf %120, %120 : vector<16x32xf32>
      %cst_50 = arith.constant dense<0.000000e+00> : vector<16xf32>
      %122 = vector.multi_reduction <add>, %121, %cst_50 [1] : vector<16x32xf32> to vector<16xf32>
      %123 = vector.shape_cast %122 : vector<16xf32> to vector<16x1xf32>
      %cst_51 = arith.constant 3.200000e+01 : f32
      %124 = vector.broadcast %cst_51 : f32 to vector<16x1xf32>
      %125 = arith.divf %123, %124 : vector<16x1xf32>
      %126 = vector.broadcast %118 : vector<16x1xf32> to vector<16x32xf32>
      %127 = arith.subf %112, %126 : vector<16x32xf32>
      %cst_52 = arith.constant 9.99999974E-6 : f32
      %128 = vector.broadcast %cst_52 : f32 to vector<16x1xf32>
      %129 = arith.addf %125, %128 : vector<16x1xf32>
      %130 = math.rsqrt %129 : vector<16x1xf32>
      %131 = vector.broadcast %130 : vector<16x1xf32> to vector<16x32xf32>
      %132 = arith.mulf %127, %131 : vector<16x32xf32>
      %133 = vector.broadcast %113 : vector<1x32xf32> to vector<16x32xf32>
      %134 = arith.mulf %132, %133 : vector<16x32xf32>
      %135 = vector.broadcast %114 : vector<1x32xf32> to vector<16x32xf32>
      %136 = arith.addf %134, %135 : vector<16x32xf32>
      %137 = arith.truncf %136 : vector<16x32xf32> to vector<16x32xbf16>
      %c0_53 = arith.constant 0 : index
      %c0_54 = arith.constant 0 : index
      %138 = vector.load %arg7[%c0_53, %c0_54] : memref<32x128xbf16, #tpu.memory_space<vmem>>, vector<32x128xbf16>
      %cst_55 = arith.constant dense<0.000000e+00> : vector<16x128xf32>
      %139 = tpu.matmul %137, %138, %cst_55 {dimension_numbers = #tpu.dot_dimension_numbers<[1], [0], [0], [1], [0, 0, 1, 1], [], []>} : vector<16x32xbf16>, vector<32x128xbf16>, vector<16x128xf32> -> vector<16x128xf32>
      %c0_56 = arith.constant 0 : index
      %c0_57 = arith.constant 0 : index
      %140 = vector.load %arg8[%c0_56, %c0_57] : memref<1x128xf32, #tpu.memory_space<vmem>>, vector<1x128xf32>
      %141 = vector.broadcast %140 : vector<1x128xf32> to vector<16x128xf32>
      %142 = arith.addf %139, %141 : vector<16x128xf32>
      %c0_58 = arith.constant 0 : index
      %c0_59 = arith.constant 0 : index
      %143 = vector.load %arg9[%c0_58, %c0_59] : memref<16x128xf32, #tpu.memory_space<vmem>>, vector<16x128xf32>
      tpu.vector_store %arg9[%c0_58, %c0_59], %142 {strides = array<i32>} : memref<16x128xf32, #tpu.memory_space<vmem>>, vector<16x128xf32>,
    } else {
    }
    return
  }
  func.func @transform_0(%arg0: i32, %arg1: i32) -> (i32, i32) {
    %c0_i32 = arith.constant 0 : i32
    return %arg0, %arg1 : i32, i32
  }
  func.func @transform_1(%arg0: i32, %arg1: i32) -> (i32, i32) {
    %c0_i32 = arith.constant 0 : i32
    %c0_i32_0 = arith.constant 0 : i32
    return %arg1, %c0_i32 : i32, i32
  }
  func.func @transform_2(%arg0: i32, %arg1: i32) -> (i32, i32) {
    %c0_i32 = arith.constant 0 : i32
    %c0_i32_0 = arith.constant 0 : i32
    %c0_i32_1 = arith.constant 0 : i32
    return %c0_i32, %c0_i32_0 : i32, i32
  }
  func.func @transform_3(%arg0: i32, %arg1: i32) -> (i32, i32) {
    %c0_i32 = arith.constant 0 : i32
    %c0_i32_0 = arith.constant 0 : i32
    %c0_i32_1 = arith.constant 0 : i32
    return %c0_i32, %c0_i32_0 : i32, i32
  }
  func.func @transform_4(%arg0: i32, %arg1: i32) -> (i32, i32) {
    %c0_i32 = arith.constant 0 : i32
    %c0_i32_0 = arith.constant 0 : i32
    %c0_i32_1 = arith.constant 0 : i32
    return %c0_i32, %c0_i32_0 : i32, i32
  }
  func.func @transform_5(%arg0: i32, %arg1: i32) -> (i32, i32) {
    %c0_i32 = arith.constant 0 : i32
    %c0_i32_0 = arith.constant 0 : i32
    %c0_i32_1 = arith.constant 0 : i32
    return %c0_i32, %c0_i32_0 : i32, i32
  }
  func.func @transform_6(%arg0: i32, %arg1: i32) -> (i32, i32) {
    %c0_i32 = arith.constant 0 : i32
    %c0_i32_0 = arith.constant 0 : i32
    %c0_i32_1 = arith.constant 0 : i32
    return %c0_i32, %c0_i32_0 : i32, i32
  }
  func.func @transform_7(%arg0: i32, %arg1: i32) -> (i32, i32) {
    %c0_i32 = arith.constant 0 : i32
    %c0_i32_0 = arith.constant 0 : i32
    return %arg0, %c0_i32 : i32, i32
  }
}

</mosaic_0001>

<bundles_post_ra>
// kernel: tpu_custom_call.1
= control target key start
LH: loop header
LB: loop body
LE: loop exit
PB: predicated region body
PF: predicated region fallthrough
CT: control target
= control target key end

     0   :  { %12 = vsyncpa [#allocation7], 0  ;;  %s1283_s24 = smov 0   ;;  %s1285_s25 = smov 0   ;;  %s1475_s0 = inlined_call_operand.vmem [shape: bf16[16,256], index: 0, kind: input, shape index: {}]   ;;  %s1476_s1 = inlined_call_operand.vmem [shape: bf16[256,32], index: 1, kind: input, shape index: {}]   ;;  %s1477_s2 = inlined_call_operand.vmem [shape: f32[16,32], index: 2, kind: input, shape index: {}]   ;;  %s1478_s3 = inlined_call_operand.vmem [shape: bf16[32,32], index: 3, kind: input, shape index: {}]   ;;  %s1479_s4 = inlined_call_operand.vmem [shape: bf16[32,32], index: 4, kind: input, shape index: {}]   ;;  %s1480_s5 = inlined_call_operand.vmem [shape: bf16[32,128], index: 5, kind: input, shape index: {}]   ;;  %s1481_s6 = inlined_call_operand.vmem [shape: f32[1,128], index: 6, kind: input, shape index: {}]   ;;  %s1482_s7 = inlined_call_operand.hbm [shape: f32[16,128], index: 7, kind: output, shape index: {}]  }
   0x1   :  { %s1287_s26 = smov 0   ;;  %s1289_s27 = smov 0  }
   0x2   :  { %s1291_s28 = smov 0  }
   0x3 LB: > { %s981_s29 = sadd.s32 4294967295, %s1232_s28   ;;  %s27_s30 = sadd.s32 1, %s1228_s27  ;;  %s1232_s28 = sphi %s1291_s28, %s18_s28   ;;  %s1228_s27 = sphi %s1289_s27, %s1487_s27   ;;  %s1224_s26 = sphi %s1287_s26, %s1486_s26   ;;  %s1220_s25 = sphi %s1285_s25, %s1485_s25   ;;  %s1216_s24 = sphi %s1283_s24, %s1484_s24  }
   0x4   : > { %p28_p0 = scmp.ge.s32.totalorder %s27_s30, 2  ;;  %p46_p1 = scmp.ne.s32.totalorder %s1220_s25, %s1216_s24 }
   0x5   : > { %p47_p2 = scmp.eq.s32.totalorder %s1232_s28, 0  ;;  %s39_s9 = sadd.s32 1, %s1220_s25 }
   0x6   : > { %s1489_s30 = smov (%p28_p0, %s27_s30), 0  ;;  %p983_p5 = scmp.ge.s32.totalorder %s1232_s28, 2 }
   0x7   : > { %p48_p3 = por %p47_p2, %p46_p1  ;;  %s35_s8 = ssub.s32 %s1228_s27, %s1489_s30 }
   0x8   : > { %p37_p4 = scmp.eq.s32.totalorder %s35_s8, 0  ;;  %244 = sbr.rel (%p983_p5) target bundleno = 18 (0x12), region = 36 }
   0xa   : > { %s1319_s10 = scalar_select %p37_p4, %s1220_s25, %s39_s9  }
   0xd   : > { %247 = sbr.rel (!%p48_p3) target bundleno = 18 (0x12), region = 40  ;;  %s249_s11 = sand.u32 (%p48_p3), 1, %s1220_s25  }
   0xe   : > { %s985_s12 = sshll.u32 (%p48_p3), %s1228_s27, 2  ;;  %s984_s13 = sshll.u32 (%p48_p3), %s249_s11, 3 }
   0xf   : > { %s256_s16 = scalar_lea.vmem (%p48_p3), %s1475_s0, %s985_s12  ;;  %s251_s17 = scalar_lea.vmem (%p48_p3), [#allocation5], %s984_s13 }
  0x10   : > { %v273_v0 = vld [vmem:[%s256_s16] sm:$0xf] (%p48_p3)  ;;  %v275_v1 = vld [vmem:[%s256_s16 + $0x8] sm:$0xf] (%p48_p3) }
  0x11   : > { %274 = vst [vmem:[%s251_s17] sm:$0xf] (%p48_p3), %v273_v0  ;;  %276 = vst [vmem:[%s251_s17 + $0x4] sm:$0xf] (%p48_p3), %v275_v1 }
  0x12 PF: > { %p986_p6 = scmp.ge.s32.totalorder %s1232_s28, 1  ;;  %p312_p7 = scmp.lt.s32.totalorder %s1232_s28, 3 }
  0x14   : > { %p313_p8 = pnand %p986_p6, %p312_p7 }
  0x15   : > { %s319_s18 = sand.u32 (!%p313_p8), 1, %s1216_s24   ;;  %s988_s19 = sshll.u32 (!%p313_p8), %s1224_s26, 4 }
  0x16   : > { %316 = sbr.rel (%p313_p8) target bundleno = 1976 (0x7b8), region = 85  ;;  %s1331_s20 = sshll.u32 (!%p313_p8), %s319_s18, 3 }
  0x17   : > { %p352_p9 = scmp.lt.s32.totalorder (!%p313_p8), %s988_s19, 31  ;;  %s321_s9 = scalar_lea.vmem (!%p313_p8), [#allocation5], %s1331_s20 }
  0x18   : > { %p990_p10 = scmp.ne.s32.totalorder (!%p313_p8), %s1224_s26, 0 }
  0x1b   : > { %s1491_s19 = smov (!%p352_p9, %s988_s19), 31  ;;  %362 = sbr.rel (%p990_p10) target bundleno = 36 (0x24), region = 93 }
  0x1c   : > { %s989_s21 = sshll.u32 %s1491_s19, 2 }
  0x1d   : > { %s1336_s8 = scalar_lea.vmem %s1476_s1, %s989_s21 }
  0x20   : > { %vm363_vm0 = vcmask 261120   ;;  %vm366_vm1 = vcmask 7168   ;;  %v1234_v2 = vmov 0.0  }
  0x21   : > { %364 = vst.msk [vmem:[#allocation2] sm:$0xff] %vm363_vm0, %v1234_v2  ;;  %365 = vst.msk [vmem:[#allocation2 + $0x8] sm:$0xff] %vm363_vm0, %v1234_v2 }
  0x22   : > { %367 = vst.msk [vmem:[#allocation3] sm:$0xff] %vm366_vm1, %v1234_v2  ;;  %368 = vst.msk [vmem:[#allocation3 + $0x8] sm:$0xff] %vm366_vm1, %v1234_v2 }
  0x23   : > { %369 = vst.msk [vmem:[#allocation4] sm:$0xff] %vm366_vm1, %v1234_v2  ;;  %370 = vst.msk [vmem:[#allocation4 + $0x8] sm:$0xff] %vm366_vm1, %v1234_v2 }
  0x24 PF: > { %v1132_v3 = vld [vmem:[%s1336_s8 + $0x38] sm:$0xff]   ;;  %v1235_v4 = vmov 0.0   ;;  %v1133_v5 = vld [vmem:[%s1336_s8 + $0x30] sm:$0xff]   ;;  %vm1236_vm2 = vmmov 0   ;;  %v1134_v6 = vld [vmem:[%s1336_s8 + $0x28] sm:$0xff]   ;;  %vm383_vm3 = vcmask 7168  }
  0x25   : > { %1033 = vmatprep.subr.bf16.mxu0 %v1235_v4  ;;  %1049 = vmatprep.mubr.msk.bf16.mxu0 %vm1236_vm2, %v1235_v4  ;;  %v371_v7 = vld [vmem:[%s321_s9] sm:$0xff]   ;;  %v1135_v10 = vld [vmem:[%s1336_s8 + $0x20] sm:$0xff]   ;;  %v1138_v15 = vld [vmem:[%s1336_s8 + $0x8] sm:$0xff]   ;;  %vm513_vm4 = vcmask 261120   ;;  %p1000_p11 = scmp.ne.s32.totalorder %s1224_s26, 1 }
  0x26   : > { %1034 = vmatpush3.bf16.msra.mxu0 %v1132_v3  ;;  %v373_v8 = vunpack.c.l.bf16 %v371_v7  ;;  %v374_v9 = vunpack.c.h.bf16 %v371_v7  ;;  %v1136_v13 = vld [vmem:[%s1336_s8 + $0x18] sm:$0xff]   ;;  %v1137_v14 = vld [vmem:[%s1336_s8 + $0x10] sm:$0xff]   ;;  %v1139_v16 = vld [vmem:[%s1336_s8] sm:$0xff]  }
  0x27   : > { %1035 = vmatprep.subr.bf16.mxu0 %v1235_v4 }
  0x28   : > { %377 = vadd.xlane.f32.xlu0 %v373_v8  ;;  %v388_v11 = vmul.f32 %v373_v8, %v373_v8  ;;  %v389_v12 = vmul.f32 %v374_v9, %v374_v9  ;;  %v398_v29 = vld [vmem:[#allocation2] sm:$0xff]  ;;  %v399_v33 = vld [vmem:[#allocation2 + $0x8] sm:$0xff] }
  0x29   : > { %v375_v17 = vld [vmem:[#allocation3] sm:$0xff]  ;;  %v376_v22 = vld [vmem:[#allocation3 + $0x8] sm:$0xff] }
  0x2a   : > { %1036 = vmatpush3.bf16.msra.mxu0 %v1133_v5  ;;  %390 = vadd.xlane.f32.xlu1 %v388_v11  ;;  %v386_v19 = vld [vmem:[#allocation4] sm:$0xff]  ;;  %v387_v25 = vld [vmem:[#allocation4 + $0x8] sm:$0xff] }
  0x2b   : > { %1037 = vmatprep.subr.bf16.mxu0 %v1235_v4 }
  0x2c   : > { %379 = vadd.xlane.f32.xlu0 %v374_v9 }
  0x2e   : > { %1038 = vmatpush3.bf16.msra.mxu0 %v1134_v6  ;;  %392 = vadd.xlane.f32.xlu1 %v389_v12 }
  0x2f   : > { %1039 = vmatprep.subr.bf16.mxu0 %v1235_v4 }
  0x32   : > { %1040 = vmatpush3.bf16.msra.mxu0 %v1135_v10 }
  0x33   : > { %1041 = vmatprep.subr.bf16.mxu0 %v1235_v4 }
  0x36   : > { %1042 = vmatpush3.bf16.msra.mxu0 %v1136_v13 }
  0x37   : > { %1043 = vmatprep.subr.bf16.mxu0 %v1235_v4 }
  0x3a   : > { %1044 = vmatpush3.bf16.msra.mxu0 %v1137_v14 }
  0x3b   : > { %1045 = vmatprep.subr.bf16.mxu0 %v1235_v4 }
  0x3e   : > { %1046 = vmatpush3.bf16.msra.mxu0 %v1138_v15 }
  0x3f   : > { %1047 = vmatprep.subr.bf16.mxu0 %v1235_v4 }
  0x42   : > { %1048 = vmatpush3.bf16.msra.mxu0 %v1139_v16 }
  0x45   : > { %1050 = vmatmul.mubr.bf16.vlgmr.msra.gmra.mxu0 %v371_v7 }
  0xb1   : > { %v378_v18 = vpop.xlane.xlu0 %377 }
  0xb2   : > { %v381_v20 = vadd.f32 %v378_v18, %v375_v17 }
  0xb3   : > { %v391_v21 = vpop.xlane.xlu1 %390 }
  0xb4   : > { %384 = vst.msk [vmem:[#allocation3] sm:$0xff] %vm383_vm3, %v381_v20  ;;  %v394_v23 = vadd.f32 %v391_v21, %v386_v19 }
  0xb5   : > { %v380_v24 = vpop.xlane.xlu0 %379 }
  0xb6   : > { %396 = vst.msk [vmem:[#allocation4] sm:$0xff] %vm383_vm3, %v394_v23  ;;  %v382_v26 = vadd.f32 %v380_v24, %v376_v22 }
  0xb7   : > { %v393_v27 = vpop.xlane.xlu1 %392 }
  0xb8   : > { %385 = vst.msk [vmem:[#allocation3 + $0x8] sm:$0xff] %vm383_vm3, %v382_v26  ;;  %v395_v28 = vadd.f32 %v393_v27, %v387_v25 }
  0xba   : > { %397 = vst.msk [vmem:[#allocation4 + $0x8] sm:$0xff] %vm383_vm3, %v395_v28 }
 0x105   : > { %v504_v30 = vpop.f32.mrf.mxu0 }
 0x106   : > { %v511_v31 = vadd.f32 %v504_v30, %v398_v29 }
 0x107   : > { %v1051_v32 = vpop.f32.mrf.mxu0 }
 0x108   : > { %514 = vst.msk [vmem:[#allocation2] sm:$0xff] %vm513_vm4, %v511_v31  ;;  %519 = sbr.rel (%p1000_p11) target bundleno = 1960 (0x7a8), region = 97 }
 0x109   : > { %v507_v34 = vpop.f32.mrf.mxu0 }
 0x10a   : > { %v512_v35 = vadd.f32 %v507_v34, %v399_v33 }
 0x10b   : > { %v1052_v36 = vpop.f32.mrf.mxu0 }
 0x10c   : > { %515 = vst.msk [vmem:[#allocation2 + $0x8] sm:$0xff] %vm513_vm4, %v512_v35 }
 0x10d   : > { %v522_v37 = vld [vmem:[#allocation3] sm:$0xff]  ;;  %v526_v38 = vld [vmem:[#allocation4] sm:$0xff]  ;;  %v523_v39 = vld [vmem:[#allocation3 + $0x8] sm:$0xff]  ;;  %v1237_v40 = vmov 0   ;;  %v550_v54 = vlaneseq  ;;  %v1238_v24 = vmov 0.0   ;;  %vm1239_vm5 = vmmov 0  }
 0x10e   : > { %1142 = vset.pattern.permute.xlu0 %v1237_v40  ;;  %v524_v41 = vmul.f32 0.004464286, %v522_v37  ;;  %v528_v42 = vmul.f32 0.004464286, %v526_v38  ;;  %v525_v43 = vmul.f32 0.004464286, %v523_v39  ;;  %1143 = vset.pattern.permute.xlu1 %v1237_v40 }
 0x10f   : > { %v527_v44 = vld [vmem:[#allocation4 + $0x8] sm:$0xff]  ;;  %v1351_v55 = vshrl.u32 %v550_v54, 7  ;;  %v1357_v57 = vld [vmem:[%s1477_s2] sm:$0xff]  ;;  %1053 = vmatprep.subr.bf16.mxu0 %v1238_v24  ;;  %1057 = vmatprep.mubr.msk.bf16.mxu0 %vm1239_vm5, %v1238_v24 }
 0x110   : > { %542 = vperm.xlu0 %1142, %v524_v41   ;;  %v530_v45 = vmul.f32 %v524_v41, %v524_v41  ;;  %v529_v46 = vmul.f32 0.004464286, %v527_v44  ;;  %v531_v47 = vmul.f32 %v525_v43, %v525_v43  ;;  %v538_v61 = vld [vmem:[#allocation2] sm:$0xff]  ;;  %v1144_v23 = vld [vmem:[%s1478_s3 + $0x8] sm:$0xff]   ;;  %1061 = vmatprep.subr.bf16.mxu1 %v1238_v24 }
 0x111   : > { %v552_v56 = vsub.s32 0, %v1351_v55  ;;  %v572_v62 = vsub.s32 1, %v1351_v55  ;;  %1054 = vmatpush3.bf16.msra.mxu0 %v1144_v23  ;;  %v1145_v25 = vld [vmem:[%s1478_s3] sm:$0xff]   ;;  %1065 = vmatprep.mubr.msk.bf16.mxu1 %vm1239_vm5, %v1238_v24  ;;  %v605_v32 = vsub.s32 2, %v1351_v55  ;;  %v611_v36 = vsub.s32 3, %v1351_v55 }
 0x112   : > { %v532_v48 = vsub.f32 %v528_v42, %v530_v45  ;;  %v533_v49 = vsub.f32 %v529_v46, %v531_v47  ;;  %1055 = vmatprep.subr.bf16.mxu0 %v1238_v24  ;;  %v622_v45 = vsub.s32 4, %v1351_v55 }
 0x113   : > { %v553_v58 = vrot.slane %v1357_v57, %v552_v56  ;;  %v573_v2 = vrot.slane %v1357_v57, %v572_v62  ;;  %v539_v4 = vld [vmem:[#allocation2 + $0x8] sm:$0xff]  ;;  %v606_v35 = vrot.slane %v1357_v57, %v605_v32  ;;  %v612_v40 = vrot.slane %v1357_v57, %v611_v36 }
 0x114   : > { %v534_v50 = vadd.f32 1e-05, %v532_v48  ;;  %v535_v51 = vadd.f32 1e-05, %v533_v49  ;;  %547 = vperm.xlu0 %1142, %v525_v43   ;;  %v623_v46 = vrot.slane %v1357_v57, %v622_v45 }
 0x115   : > { %1056 = vmatpush3.bf16.msra.mxu0 %v1145_v25 }
 0x116   : > { %1150 = vrsqrt.f32 %v534_v50  ;;  %1069 = vmatprep.subr.bf16.mxu0 %v1238_v24 }
 0x117   : > { %1152 = vrsqrt.f32 %v535_v51 }
 0x123   : > { %v1151_v52 = vpop.eup %1150 }
 0x124   : > { %560 = vperm.xlu1 %1143, %v1151_v52   ;;  %v1153_v53 = vpop.eup %1152 }
 0x128   : > { %565 = vperm.xlu1 %1143, %v1153_v53  }
 0x18b   : > { %v543_v59 = vpop.permute.xlu0 %542 }
 0x18c   : > { %v554_v60 = vmul.f32 %v553_v58, %v543_v59 }
 0x18e   : > { %v556_v0 = vsub.f32 %v538_v61, %v554_v60 }
 0x18f   : > { %v548_v63 = vpop.permute.xlu0 %547 }
 0x190   : > { %v555_v1 = vmul.f32 %v553_v58, %v548_v63 }
 0x192   : > { %v557_v7 = vsub.f32 %v539_v4, %v555_v1 }
 0x19f   : > { %v561_v3 = vpop.permute.xlu1 %560 }
 0x1a0   : > { %v568_v5 = vmul.f32 %v561_v3, %v556_v0 }
 0x1a2   : > { %v1366_v6 = vadd.f32 %v573_v2, %v568_v5 }
 0x1a3   : > { %v566_v8 = vpop.permute.xlu1 %565 }
 0x1a4   : > { %v569_v9 = vmul.f32 %v566_v8, %v557_v7  ;;  %v576_v10 = vsel %vm513_vm4, %v1366_v6, 0.0 }
 0x1a5   : > { %577 = vadd.xlane.f32.xlu0 %v576_v10  ;;  %v1147_v10 = vld [vmem:[%s1479_s4] sm:$0xff]  }
 0x1a6   : > { %v1370_v11 = vadd.f32 %v573_v2, %v569_v9  ;;  %v1146_v9 = vld [vmem:[%s1479_s4 + $0x8] sm:$0xff]  }
 0x1a7   : > { %1062 = vmatpush3.bf16.msra.mxu1 %v1146_v9 }
 0x1a8   : > { %v579_v12 = vsel %vm513_vm4, %v1370_v11, 0.0  ;;  %1063 = vmatprep.subr.bf16.mxu1 %v1238_v24 }
 0x1a9   : > { %580 = vadd.xlane.f32.xlu1 %v579_v12 }
 0x1ab   : > { %1064 = vmatpush3.bf16.msra.mxu1 %v1147_v10 }
 0x22e   : > { %v578_v13 = vpop.xlane.xlu0 %577 }
 0x22f   : > { %v583_v14 = vmul.f32 0.03125, %v578_v13 }
 0x231   : > { %v585_v15 = vsub.f32 %v1366_v6, %v583_v14 }
 0x232   : > { %v581_v16 = vpop.xlane.xlu1 %580 }
 0x233   : > { %v584_v17 = vmul.f32 0.03125, %v581_v16  ;;  %v587_v18 = vmul.f32 %v585_v15, %v585_v15 }
 0x235   : > { %v586_v19 = vsub.f32 %v1370_v11, %v584_v17  ;;  %v589_v20 = vsel %vm513_vm4, %v587_v18, 0.0  ;;  %v712_v17 = vsub.s32 5, %v1351_v55 }
 0x236   : > { %590 = vadd.xlane.f32.xlu0 %v589_v20 }
 0x237   : > { %v588_v21 = vmul.f32 %v586_v19, %v586_v19  ;;  %v713_v20 = vrot.slane %v1357_v57, %v712_v17 }
 0x239   : > { %v592_v22 = vsel %vm513_vm4, %v588_v21, 0.0  ;;  %v718_v21 = vsub.s32 6, %v1351_v55 }
 0x23a   : > { %593 = vadd.xlane.f32.xlu0 %v592_v22 }
 0x2bf   : > { %v591_v26 = vpop.xlane.xlu0 %590 }
 0x2c0   : > { %v595_v27 = vmul.f32 0.03125, %v591_v26  ;;  %v719_v26 = vrot.slane %v1357_v57, %v718_v21 }
 0x2c2   : > { %v597_v28 = vadd.f32 1e-05, %v595_v27 }
 0x2c3   : > { %v594_v29 = vpop.xlane.xlu0 %593 }
 0x2c4   : > { %1154 = vrsqrt.f32 %v597_v28  ;;  %v596_v30 = vmul.f32 0.03125, %v594_v29 }
 0x2c6   : > { %v598_v31 = vadd.f32 1e-05, %v596_v30 }
 0x2c8   : > { %1156 = vrsqrt.f32 %v598_v31  ;;  %v729_v31 = vsub.s32 7, %v1351_v55 }
 0x2ca   : > { %v730_v32 = vrot.slane %v1357_v57, %v729_v31 }
 0x2d1   : > { %v1155_v33 = vpop.eup %1154 }
 0x2d2   : > { %v601_v34 = vmul.f32 %v1155_v33, %v585_v15 }
 0x2d4   : > { %v607_v39 = vmul.f32 %v606_v35, %v601_v34 }
 0x2d5   : > { %v1157_v37 = vpop.eup %1156 }
 0x2d6   : > { %v602_v38 = vmul.f32 %v1157_v37, %v586_v19  ;;  %v613_v42 = vadd.f32 %v612_v40, %v607_v39 }
 0x2d8   : > { %v608_v41 = vmul.f32 %v606_v35, %v602_v38 }
 0x2da   : > { %v614_v43 = vadd.f32 %v612_v40, %v608_v41 }
 0x2dc   : > { %v615_v44 = vpack.c.bf16 %v614_v43, %v613_v42 }
 0x2de   : > { %1058 = vmatmul.mubr.msk.bf16.vlgmr.msra.gmra.mxu0 %vm513_vm4, %v615_v44 }
 0x2df   : > { %1073 = vmatprep.mubr.msk.bf16.mxu0 %vm1239_vm5, %v1238_v24 }
 0x39e   : > { %v673_v47 = vpop.f32.mrf.mxu0 }
 0x39f   : > { %v674_v48 = vadd.f32 %v673_v47, %v623_v46 }
 0x3a0   : > { %v1059_v49 = vpop.f32.mrf.mxu0 }
 0x3a1   : > { %v680_v50 = vmax.f32 %v674_v48, 0.0 }
 0x3a2   : > { %v676_v51 = vpop.f32.mrf.mxu0 }
 0x3a3   : > { %v682_v52 = vadd.f32 %v680_v50, %v1366_v6  ;;  %v677_v53 = vadd.f32 %v676_v51, %v623_v46 }
 0x3a4   : > { %v1060_v54 = vpop.f32.mrf.mxu0 }
 0x3a5   : > { %v681_v58 = vmax.f32 %v677_v53, 0.0  ;;  %v684_v59 = vsel %vm513_vm4, %v682_v52, 0.0  ;;  %v1148_v54 = vld [vmem:[%s1480_s5 + $0x8] sm:$0xff]  }
 0x3a6   : > { %685 = vadd.xlane.f32.xlu1 %v684_v59  ;;  %1070 = vmatpush3.bf16.msra.mxu0 %v1148_v54 }
 0x3a7   : > { %v683_v60 = vadd.f32 %v681_v58, %v1370_v11  ;;  %v1149_v58 = vld [vmem:[%s1480_s5] sm:$0xff]   ;;  %1071 = vmatprep.subr.bf16.mxu0 %v1238_v24 }
 0x3a9   : > { %v687_v61 = vsel %vm513_vm4, %v683_v60, 0.0 }
 0x3aa   : > { %688 = vadd.xlane.f32.xlu0 %v687_v61  ;;  %1072 = vmatpush3.bf16.msra.mxu0 %v1149_v58 }
 0x42f   : > { %v686_v63 = vpop.xlane.xlu1 %685 }
 0x430   : > { %v690_v0 = vmul.f32 0.03125, %v686_v63 }
 0x432   : > { %v692_v1 = vsub.f32 %v682_v52, %v690_v0 }
 0x433   : > { %v689_v2 = vpop.xlane.xlu0 %688 }
 0x434   : > { %v691_v3 = vmul.f32 0.03125, %v689_v2  ;;  %v694_v4 = vmul.f32 %v692_v1, %v692_v1  ;;  %v521_v2 = vld [vmem:[%s1477_s2 + $0x8] sm:$0xff] }
 0x435   : > { %v826_v24 = vrot.slane %v521_v2, %v572_v62 }
 0x436   : > { %v693_v5 = vsub.f32 %v683_v60, %v691_v3  ;;  %v696_v6 = vsel %vm513_vm4, %v694_v4, 0.0  ;;  %v820_v3 = vrot.slane %v521_v2, %v552_v56 }
 0x437   : > { %697 = vadd.xlane.f32.xlu1 %v696_v6 }
 0x438   : > { %v695_v7 = vmul.f32 %v693_v5, %v693_v5 }
 0x43a   : > { %v699_v8 = vsel %vm513_vm4, %v695_v7, 0.0 }
 0x43b   : > { %700 = vadd.xlane.f32.xlu0 %v699_v8 }
 0x4c0   : > { %v698_v11 = vpop.xlane.xlu1 %697 }
 0x4c1   : > { %v702_v12 = vmul.f32 0.03125, %v698_v11 }
 0x4c3   : > { %v704_v13 = vadd.f32 1e-05, %v702_v12 }
 0x4c4   : > { %v701_v14 = vpop.xlane.xlu0 %700 }
 0x4c5   : > { %1158 = vrsqrt.f32 %v704_v13  ;;  %v703_v15 = vmul.f32 0.03125, %v701_v14  ;;  %v1007_v13 = vld [vmem:[%s1481_s6] ss:$0 sm:$0xff] }
 0x4c7   : > { %v705_v16 = vadd.f32 1e-05, %v703_v15 }
 0x4c9   : > { %1160 = vrsqrt.f32 %v705_v16 }
 0x4d2   : > { %v1159_v18 = vpop.eup %1158 }
 0x4d3   : > { %v708_v19 = vmul.f32 %v1159_v18, %v692_v1 }
 0x4d5   : > { %v714_v25 = vmul.f32 %v713_v20, %v708_v19 }
 0x4d6   : > { %v1161_v22 = vpop.eup %1160 }
 0x4d7   : > { %v709_v23 = vmul.f32 %v1161_v22, %v693_v5  ;;  %v720_v28 = vadd.f32 %v719_v26, %v714_v25 }
 0x4d9   : > { %v715_v27 = vmul.f32 %v713_v20, %v709_v23 }
 0x4db   : > { %v721_v29 = vadd.f32 %v719_v26, %v715_v27 }
 0x4dd   : > { %v722_v30 = vpack.c.bf16 %v721_v29, %v720_v28 }
 0x4df   : > { %1066 = vmatmul.mubr.msk.bf16.vlgmr.msra.gmra.mxu1 %vm513_vm4, %v722_v30 }
 0x59f   : > { %v780_v33 = vpop.f32.mrf.mxu1 }
 0x5a0   : > { %v781_v34 = vadd.f32 %v780_v33, %v730_v32 }
 0x5a1   : > { %v1067_v35 = vpop.f32.mrf.mxu1 }
 0x5a2   : > { %v787_v36 = vmax.f32 %v781_v34, 0.0 }
 0x5a3   : > { %v783_v37 = vpop.f32.mrf.mxu1 }
 0x5a4   : > { %v784_v38 = vadd.f32 %v783_v37, %v730_v32  ;;  %v789_v39 = vadd.f32 %v787_v36, %v682_v52 }
 0x5a5   : > { %v1068_v40 = vpop.f32.mrf.mxu1 }
 0x5a6   : > { %v788_v41 = vmax.f32 %v784_v38, 0.0  ;;  %v791_v42 = vsel %vm513_vm4, %v789_v39, 0.0 }
 0x5a7   : > { %792 = vadd.xlane.f32.xlu1 %v791_v42 }
 0x5a8   : > { %v790_v43 = vadd.f32 %v788_v41, %v683_v60 }
 0x5aa   : > { %v794_v44 = vsel %vm513_vm4, %v790_v43, 0.0 }
 0x5ab   : > { %795 = vadd.xlane.f32.xlu0 %v794_v44 }
 0x630   : > { %v793_v45 = vpop.xlane.xlu1 %792 }
 0x631   : > { %v797_v46 = vmul.f32 0.03125, %v793_v45 }
 0x633   : > { %v799_v47 = vsub.f32 %v789_v39, %v797_v46 }
 0x634   : > { %v796_v57 = vpop.xlane.xlu0 %795 }
 0x635   : > { %v798_v48 = vmul.f32 0.03125, %v796_v57  ;;  %v801_v49 = vmul.f32 %v799_v47, %v799_v47 }
 0x637   : > { %v800_v50 = vsub.f32 %v790_v43, %v798_v48  ;;  %v803_v51 = vsel %vm513_vm4, %v801_v49, 0.0 }
 0x638   : > { %804 = vadd.xlane.f32.xlu1 %v803_v51 }
 0x639   : > { %v802_v52 = vmul.f32 %v800_v50, %v800_v50 }
 0x63b   : > { %v806_v53 = vsel %vm513_vm4, %v802_v52, 0.0 }
 0x63c   : > { %807 = vadd.xlane.f32.xlu0 %v806_v53 }
 0x6c1   : > { %v805_v59 = vpop.xlane.xlu1 %804 }
 0x6c2   : > { %v809_v60 = vmul.f32 0.03125, %v805_v59 }
 0x6c4   : > { %v811_v61 = vadd.f32 1e-05, %v809_v60 }
 0x6c5   : > { %v808_v63 = vpop.xlane.xlu0 %807 }
 0x6c6   : > { %1162 = vrsqrt.f32 %v811_v61  ;;  %v810_v0 = vmul.f32 0.03125, %v808_v63 }
 0x6c8   : > { %v812_v1 = vadd.f32 1e-05, %v810_v0 }
 0x6ca   : > { %1164 = vrsqrt.f32 %v812_v1 }
 0x6d3   : > { %v1163_v4 = vpop.eup %1162 }
 0x6d4   : > { %v815_v5 = vmul.f32 %v1163_v4, %v799_v47 }
 0x6d6   : > { %v821_v6 = vmul.f32 %v820_v3, %v815_v5 }
 0x6d7   : > { %v1165_v7 = vpop.eup %1164 }
 0x6d8   : > { %v816_v8 = vmul.f32 %v1165_v7, %v800_v50  ;;  %v827_v9 = vadd.f32 %v826_v24, %v821_v6 }
 0x6da   : > { %v822_v10 = vmul.f32 %v820_v3, %v816_v8 }
 0x6dc   : > { %v828_v11 = vadd.f32 %v826_v24, %v822_v10 }
 0x6de   : > { %v829_v12 = vpack.c.bf16 %v828_v11, %v827_v9 }
 0x6e0   : > { %1074 = vmatmul.mubr.msk.bf16.vlgmr.msra.gmra.mxu0 %vm513_vm4, %v829_v12 }
 0x7a0   : > { %v890_v14 = vpop.f32.mrf.mxu0 }
 0x7a1   : > { %v891_v56 = vadd.f32 %v1007_v13, %v890_v14 }
 0x7a2   : > { %v1075_v15 = vpop.f32.mrf.mxu0 }
 0x7a3   : > { %897 = vst [vmem:[#allocation6] sm:$0xff] %v891_v56 }
 0x7a4   : > { %v893_v55 = vpop.f32.mrf.mxu0 }
 0x7a5   : > { %v894_v62 = vadd.f32 %v1007_v13, %v893_v55 }
 0x7a6   : > { %v1076_v16 = vpop.f32.mrf.mxu0 }
 0x7a7   : > { %898 = vst [vmem:[#allocation6 + $0x8] sm:$0xff] %v894_v62 }
 0x7a8 PF: > { %p1445_p12 = scmp.eq.s32.totalorder %s981_s29, 1  ;;  %s1240_s11 = smov [#allocation6]  }
 0x7a9   : > { %s908_s12 = sshll.u32 %s1240_s11, 4  ;;  %s909_s12 = int_to_ptr.vmem [resolvable:$true] %s908_s12 }
 0x7aa   : > { %s1166_s13 = scalar_lea.vmem %s909_s12, 256  ;;  %p1173_p2 = scmp.lt.s32.totalorder %s909_s12, %s909_s12 }
 0x7ab   : > { %p1167_p13 = scmp.ne.s32.totalorder %s909_s12, %s1166_s13  ;;  %p1174_p3 = scmp.lt.s32.totalorder %s1166_s13, %s1166_s13 }
 0x7ad   : > { %p1168_p0 = pnand %p1167_p13, %p1445_p12  ;;  %p1175_p4 = por %p1174_p3, %p1173_p2 }
 0x7af   : > { %p1169_p1 = pneg %p1168_p0 }
 0x7b1   : > { %p1176_p5 = pnand %p1175_p4, %p1169_p1 }
 0x7b3   : > { %1179 = shalt.err (!%p1176_p5)
}
 0x7b4   : > { %s1241_s14 = smov 128   ;;  %s1242_s29 = smov 8  }
 0x7b5   : > { %1078 = dma.vmem_to_hbm [thread:$0]  (%p1445_p12), %s909_s12, 256, %s1482_s7, [#allocation7], %s1241_s14, %s1241_s14, %s1242_s29  }
 0x7b6   : > { %1211 = dma.done.wait (%p1445_p12), [#allocation7], 256  }
 0x7b7   : > { %1213 = vsyncadd (%p1445_p12), [#allocation7], 4294967040 }
 0x7b8 PF: > { %s18_s28 = sadd.s32 1, %s1232_s28   ;;  %s1484_s24 = smov %s1220_s25 }
 0x7b9   : > { %p15_p6 = scmp.ge.s32.totalorder %s18_s28, 4   ;;  %s1485_s25 = smov %s1319_s10 }
 0x7ba   : > { %s1486_s26 = smov %s1228_s27  ;;  %s1487_s27 = smov %s1489_s30 }
 0x7bb   :  { %17 = sbr.rel (!%p15_p6) target bundleno = 3 (0x3), region = 133 }
 0x7c0   :  { %924 = vsyncpa [#allocation7], 1 }
 0x7c1   :  { %926 = vsyncpa [#allocation7 + $0x1], 1 }

</bundles_post_ra>
